<compile_context>
chip_gen: v7x
topology: tpu7x:2x2x1
jax: 0.10.0
libtpu: 0.0.40
codegen_flags: <defaults>
</compile_context>

<pallas_src>
import jax
import jax.numpy as jnp
from jax.experimental import pallas as pl
from jax.experimental.pallas import tpu as pltpu

EPS = 1e-5                      # nn.BatchNorm2d default
_VMEM_LIMIT = 32 * 1024 * 1024  # explicit, safe on v5e/v6e (128 MiB) and v7x (64 MiB)
_MAX_HW_TILE = 8192             # lanes per tile cap (tile bytes stay well under VMEM)


def _pick_hw_tile(hw):
    """Largest multiple of 128 that divides hw (capped); else the full extent."""
    if hw % 128 != 0:
        return hw  # block dim equal to full array dim is always allowed
    t = (min(hw, _MAX_HW_TILE) // 128) * 128
    while hw % t != 0:
        t -= 128
    return t


# ---------------------------------------------------------------------------
# Kernel 1: [optional pre-affine + ReLU] -> 1x1 conv -> write conv output and
#           accumulate per-channel sum / sum-of-squares (BN batch statistics).
# ---------------------------------------------------------------------------
def _conv_stats_body(w_ref, x_ref, y_ref, st_ref, sc_ref, sh_ref):
    j = pl.program_id(1)
    x = x_ref[0]                                    # (Cin, Thw), lane-dense
    if sc_ref is not None:                          # previous stage's BN affine + ReLU
        x = jnp.maximum(x * sc_ref[...] + sh_ref[...], 0.0)
    # 1x1 conv == (Cout, Cin) @ (Cin, Thw) on the MXU (tiny K; MXU is off the
    # binding load/store slot so this is effectively free).
    y = jnp.dot(w_ref[...], x, preferred_element_type=jnp.float32)   # (Cout, Thw)
    y_ref[0] = y

    # Per-channel partial statistics (cross-lane reduce -> XLU, free slot).
    s = jnp.sum(y, axis=1, keepdims=True)           # (Cout, 1)
    ss = jnp.sum(y * y, axis=1, keepdims=True)      # (Cout, 1)

    @pl.when(j == 0)
    def _init():
        st_ref[...] = jnp.zeros_like(st_ref)

    st_ref[0, 0] = st_ref[0, 0] + s
    st_ref[0, 1] = st_ref[0, 1] + ss


def _make_conv_stats_kernel(apply_pre):
    if apply_pre:
        def kernel(w_ref, sc_ref, sh_ref, x_ref, y_ref, st_ref):
            _conv_stats_body(w_ref, x_ref, y_ref, st_ref, sc_ref, sh_ref)
    else:
        def kernel(w_ref, x_ref, y_ref, st_ref):
            _conv_stats_body(w_ref, x_ref, y_ref, st_ref, None, None)
    return kernel


def _conv_stats(x3, w, pre_scale, pre_shift, thw):
    """x3: (N, Cin, HW) f32; w: (Cout, Cin).  Returns (y, stats):
       y: (N, Cout, HW)  -- conv output (pre-BN), NCHW layout
       stats: (N, 2, Cout, 1) -- per-batch-element sum / sumsq of y per channel."""
    N, cin, hw = x3.shape
    cout = w.shape[0]
    nt = hw // thw
    apply_pre = pre_scale is not None

    in_specs = [pl.BlockSpec((cout, cin), lambda n, j: (0, 0))]
    args = [w]
    if apply_pre:
        in_specs += [pl.BlockSpec((cin, 1), lambda n, j: (0, 0)),
                     pl.BlockSpec((cin, 1), lambda n, j: (0, 0))]
        args += [pre_scale, pre_shift]
    in_specs += [pl.BlockSpec((1, cin, thw), lambda n, j: (n, 0, j))]
    args += [x3]

    y, stats = pl.pallas_call(
        _make_conv_stats_kernel(apply_pre),
        out_shape=(jax.ShapeDtypeStruct((N, cout, hw), jnp.float32),
                   jax.ShapeDtypeStruct((N, 2, cout, 1), jnp.float32)),
        grid=(N, nt),
        in_specs=in_specs,
        out_specs=(pl.BlockSpec((1, cout, thw), lambda n, j: (n, 0, j)),
                   pl.BlockSpec((1, 2, cout, 1), lambda n, j: (n, 0, 0, 0))),
        compiler_params=pltpu.CompilerParams(
            dimension_semantics=("parallel", "arbitrary"),
            vmem_limit_bytes=_VMEM_LIMIT),
    )(*args)
    return y, stats


# ---------------------------------------------------------------------------
# Kernel 2: final BN affine (+ optional residual add) + ReLU, fully streamed.
# ---------------------------------------------------------------------------
def _make_final_kernel(with_residual):
    if with_residual:
        def kernel(sc_ref, sh_ref, y_ref, r_ref, o_ref):
            o_ref[0] = jnp.maximum(y_ref[0] * sc_ref[...] + sh_ref[...] + r_ref[0], 0.0)
    else:
        def kernel(sc_ref, sh_ref, y_ref, o_ref):
            o_ref[0] = jnp.maximum(y_ref[0] * sc_ref[...] + sh_ref[...], 0.0)
    return kernel


def _final_affine_relu(y3, scale, shift, residual, thw):
    N, c, hw = y3.shape
    nt = hw // thw
    in_specs = [pl.BlockSpec((c, 1), lambda n, j: (0, 0)),
                pl.BlockSpec((c, 1), lambda n, j: (0, 0)),
                pl.BlockSpec((1, c, thw), lambda n, j: (n, 0, j))]
    args = [scale, shift, y3]
    if residual is not None:
        in_specs.append(pl.BlockSpec((1, c, thw), lambda n, j: (n, 0, j)))
        args.append(residual)
    return pl.pallas_call(
        _make_final_kernel(residual is not None),
        out_shape=jax.ShapeDtypeStruct((N, c, hw), jnp.float32),
        grid=(N, nt),
        in_specs=in_specs,
        out_specs=pl.BlockSpec((1, c, thw), lambda n, j: (n, 0, j)),
        compiler_params=pltpu.CompilerParams(
            dimension_semantics=("parallel", "parallel"),
            vmem_limit_bytes=_VMEM_LIMIT),
    )(*args)


# ---------------------------------------------------------------------------
# BN batch-stats -> pre-folded per-channel affine (tiny Cout-length vectors).
# ---------------------------------------------------------------------------
def _bn_affine(stats, gamma, beta, count):
    s = jnp.sum(stats[:, 0, :, 0], axis=0)           # (C,) sum over batch elements
    ss = jnp.sum(stats[:, 1, :, 0], axis=0)          # (C,)
    mean = s / count
    var = jnp.maximum(ss / count - mean * mean, 0.0)  # biased variance (training mode)
    scale = gamma * jax.lax.rsqrt(var + EPS)
    shift = beta - mean * scale
    return scale.reshape(-1, 1).astype(jnp.float32), shift.reshape(-1, 1).astype(jnp.float32)


# ---------------------------------------------------------------------------
# ResLayer forward.
# ---------------------------------------------------------------------------
@jax.jit
def res_layer_forward(x_nchw, params):
    """params = (w1, w2, w3, gamma1, beta1, gamma2, beta2, gamma3, beta3).
    w_k are the squeezed 1x1 conv kernels (Cout, Cin).  Conv biases are omitted:
    training-mode BN cancels them exactly."""
    w1, w2, w3, g1, b1, g2, b2, g3, b3 = params
    N, cin, H, W = x_nchw.shape
    hw = H * W
    thw = _pick_hw_tile(hw)
    count = jnp.float32(N * hw)

    x3 = x_nchw.reshape(N, cin, hw).astype(jnp.float32)   # free view, no transpose

    # Stage 1: y1 = conv1(x)
    y1, st1 = _conv_stats(x3, w1.astype(jnp.float32), None, None, thw)
    sc1, sh1 = _bn_affine(st1, g1, b1, count)
    # Stage 2: y2 = conv2(relu(bn1(y1)))   (bn1-affine + relu fused into the conv pass)
    y2, st2 = _conv_stats(y1, w2.astype(jnp.float32), sc1, sh1, thw)
    sc2, sh2 = _bn_affine(st2, g2, b2, count)
    # Stage 3: y3 = conv3(relu(bn2(y2)))
    y3, st3 = _conv_stats(y2, w3.astype(jnp.float32), sc2, sh2, thw)
    sc3, sh3 = _bn_affine(st3, g3, b3, count)

    cout3 = w3.shape[0]
    skip = (cin == cout3)                                   # inplanes == planes*expansion
    out = _final_affine_relu(y3, sc3, sh3, x3 if skip else None, thw)
    return out.reshape(N, cout3, H, W)


# ---------------------------------------------------------------------------
# Pure-JAX reference (faithful to the PyTorch module forward, training-mode BN).
# ---------------------------------------------------------------------------
def _reference(x, params):
    w1, w2, w3, g1, b1, g2, b2, g3, b3 = params

    def conv_bn(h, w, gamma, beta):
        y = jnp.einsum('oc,nchw->nohw', w, h, precision=jax.lax.Precision.HIGHEST)
        mean = jnp.mean(y, axis=(0, 2, 3), keepdims=True)
        var = jnp.mean((y - mean) ** 2, axis=(0, 2, 3), keepdims=True)
        return ((y - mean) * jax.lax.rsqrt(var + EPS) * gamma.reshape(1, -1, 1, 1)
                + beta.reshape(1, -1, 1, 1))

    out = jax.nn.relu(conv_bn(x, w1, g1, b1))
    out = jax.nn.relu(conv_bn(out, w2, g2, b2))
    out = conv_bn(out, w3, g3, b3)
    if x.shape[1] == w3.shape[0]:
        out = out + x
    return jax.nn.relu(out)


if __name__ == "__main__":
    key = jax.random.PRNGKey(0)

    def init_params(k, inplanes, planes, expansion):
        ks = jax.random.split(k, 6)
        # conv1x1 init: weight ~ N(0, 0.01), bias = 0 (bias dropped: cancelled by BN)
        w1 = 0.01 * jax.random.normal(ks[0], (planes, inplanes), jnp.float32)
        w2 = 0.01 * jax.random.normal(ks[1], (planes, planes), jnp.float32)
        w3 = 0.01 * jax.random.normal(ks[2], (planes * expansion, planes), jnp.float32)
        # BatchNorm2d: weight (gamma) ~ U(0,1) (pytorch_ge12 branch), bias (beta) = 0
        g1 = jax.random.uniform(ks[3], (planes,), dtype=jnp.float32)
        g2 = jax.random.uniform(ks[4], (planes,), dtype=jnp.float32)
        g3 = jax.random.uniform(ks[5], (planes * expansion,), dtype=jnp.float32)
        b1 = jnp.zeros((planes,), jnp.float32)
        b2 = jnp.zeros((planes,), jnp.float32)
        b3 = jnp.zeros((planes * expansion,), jnp.float32)
        return (w1, w2, w3, g1, b1, g2, b2, g3, b3)

    # (inplanes, planes, expansion): first config = no skip, second exercises the
    # residual-skip path (inplanes == planes * expansion).
    configs = [(4, 8, 4, "no_skip"), (16, 4, 4, "skip")]
    N, H, W = 2, 16, 16

    for inplanes, planes, expansion, tag in configs:
        key, kx, kp = jax.random.split(key, 3)
        x = jax.random.normal(kx, (N, inplanes, H, W), dtype=jnp.float32)
        params = init_params(kp, inplanes, planes, expansion)

        out = res_layer_forward(x, params)
        jax.block_until_ready(out)

        ref = _reference(x, params)
        assert out.shape == (N, planes * expansion, H, W), (tag, out.shape)
        assert bool(jnp.all(out >= 0.0)), tag                    # ReLU sanity
        err = float(jnp.max(jnp.abs(out - ref)))
        assert err < 5e-3, f"{tag}: max abs err {err}"

    print("KERNEL_OK")
</pallas_src>

<mosaic_0001>
module attributes {stable_mosaic.version = 11 : i64} {
  func.func @kernel(%arg0: i32, %arg1: i32, %arg2: memref<8x4xf32, #tpu.memory_space<vmem>>, %arg3: memref<1x4x256xf32, #tpu.memory_space<vmem>>, %arg4: memref<1x8x256xf32, #tpu.memory_space<vmem>>, %arg5: memref<1x2x8x1xf32, #tpu.memory_space<vmem>>) attributes {dimension_semantics = [#tpu.dimension_semantics<parallel>, #tpu.dimension_semantics<arbitrary>], iteration_bounds = array<i64: 2, 1>, scalar_prefetch = 0 : i64, scratch_operands = 0 : i64, tpu.core_type = #tpu.core_type<tc>, window_params = [{pipeline_mode = #tpu.pipeline_mode<synchronous>, transform_indices = @transform_0, window_bounds = array<i64: 8, 4>}, {transform_indices = @transform_1, window_bounds = array<i64: 1, 4, 256>}, {transform_indices = @transform_2, window_bounds = array<i64: 1, 8, 256>}, {transform_indices = @transform_3, window_bounds = array<i64: 1, 2, 8, 1>}]} {
    %c0 = arith.constant 0 : index
    %c0_0 = arith.constant 0 : index
    %c0_1 = arith.constant 0 : index
    %0 = vector.load %arg3[%c0, %c0_0, %c0_1] : memref<1x4x256xf32, #tpu.memory_space<vmem>>, vector<1x4x256xf32>
    %1 = vector.shape_cast %0 : vector<1x4x256xf32> to vector<4x256xf32>
    %c0_2 = arith.constant 0 : index
    %c0_3 = arith.constant 0 : index
    %2 = vector.load %arg2[%c0_2, %c0_3] : memref<8x4xf32, #tpu.memory_space<vmem>>, vector<8x4xf32>
    %cst = arith.constant dense<0.000000e+00> : vector<8x256xf32>
    %3 = tpu.matmul %2, %1, %cst {dimension_numbers = #tpu.dot_dimension_numbers<[1], [0], [0], [1], [0, 0, 1, 1], [], []>} : vector<8x4xf32>, vector<4x256xf32>, vector<8x256xf32> -> vector<8x256xf32>
    %c0_4 = arith.constant 0 : index
    %c0_5 = arith.constant 0 : index
    %c0_6 = arith.constant 0 : index
    %4 = vector.load %arg4[%c0_4, %c0_5, %c0_6] : memref<1x8x256xf32, #tpu.memory_space<vmem>>, vector<1x8x256xf32>
    %5 = vector.shape_cast %4 : vector<1x8x256xf32> to vector<8x256xf32>
    %6 = vector.shape_cast %3 : vector<8x256xf32> to vector<1x8x256xf32>
    tpu.vector_store %arg4[%c0_4, %c0_5, %c0_6], %6 {strides = array<i32>} : memref<1x8x256xf32, #tpu.memory_space<vmem>>, vector<1x8x256xf32>,
    %cst_7 = arith.constant dense<0.000000e+00> : vector<8xf32>
    %7 = vector.multi_reduction <add>, %3, %cst_7 [1] : vector<8x256xf32> to vector<8xf32>
    %8 = vector.shape_cast %7 : vector<8xf32> to vector<8x1xf32>
    %9 = arith.mulf %3, %3 : vector<8x256xf32>
    %cst_8 = arith.constant dense<0.000000e+00> : vector<8xf32>
    %10 = vector.multi_reduction <add>, %9, %cst_8 [1] : vector<8x256xf32> to vector<8xf32>
    %11 = vector.shape_cast %10 : vector<8xf32> to vector<8x1xf32>
    %c0_i32 = arith.constant 0 : i32
    %12 = arith.cmpi eq, %arg1, %c0_i32 : i32
    %13 = arith.extui %12 : i1 to i32
    %c0_i32_9 = arith.constant 0 : i32
    %14 = arith.cmpi ne, %13, %c0_i32_9 : i32
    scf.if %14 {
      %cst_25 = arith.constant 0.000000e+00 : f32
      %27 = vector.broadcast %cst_25 : f32 to vector<1x2x8x1xf32>
      %c0_26 = arith.constant 0 : index
      %c0_27 = arith.constant 0 : index
      %c0_28 = arith.constant 0 : index
      %c0_29 = arith.constant 0 : index
      %28 = vector.load %arg5[%c0_26, %c0_27, %c0_28, %c0_29] : memref<1x2x8x1xf32, #tpu.memory_space<vmem>>, vector<1x2x8x1xf32>
      tpu.vector_store %arg5[%c0_26, %c0_27, %c0_28, %c0_29], %27 {strides = array<i32>} : memref<1x2x8x1xf32, #tpu.memory_space<vmem>>, vector<1x2x8x1xf32>,
    } else {
    }
    %c0_10 = arith.constant 0 : index
    %c0_11 = arith.constant 0 : index
    %c0_12 = arith.constant 0 : index
    %c0_13 = arith.constant 0 : index
    %15 = vector.load %arg5[%c0_10, %c0_11, %c0_12, %c0_13] : memref<1x2x8x1xf32, #tpu.memory_space<vmem>>, vector<1x1x8x1xf32>
    %16 = vector.shape_cast %15 : vector<1x1x8x1xf32> to vector<8x1xf32>
    %17 = arith.addf %16, %8 : vector<8x1xf32>
    %c0_14 = arith.constant 0 : index
    %c0_15 = arith.constant 0 : index
    %c0_16 = arith.constant 0 : index
    %c0_17 = arith.constant 0 : index
    %18 = vector.load %arg5[%c0_14, %c0_15, %c0_16, %c0_17] : memref<1x2x8x1xf32, #tpu.memory_space<vmem>>, vector<1x1x8x1xf32>
    %19 = vector.shape_cast %18 : vector<1x1x8x1xf32> to vector<8x1xf32>
    %20 = vector.shape_cast %17 : vector<8x1xf32> to vector<1x1x8x1xf32>
    tpu.vector_store %arg5[%c0_14, %c0_15, %c0_16, %c0_17], %20 {strides = array<i32>} : memref<1x2x8x1xf32, #tpu.memory_space<vmem>>, vector<1x1x8x1xf32>,
    %c0_18 = arith.constant 0 : index
    %c1 = arith.constant 1 : index
    %c0_19 = arith.constant 0 : index
    %c0_20 = arith.constant 0 : index
    %21 = vector.load %arg5[%c0_18, %c1, %c0_19, %c0_20] : memref<1x2x8x1xf32, #tpu.memory_space<vmem>>, vector<1x1x8x1xf32>
    %22 = vector.shape_cast %21 : vector<1x1x8x1xf32> to vector<8x1xf32>
    %23 = arith.addf %22, %11 : vector<8x1xf32>
    %c0_21 = arith.constant 0 : index
    %c1_22 = arith.constant 1 : index
    %c0_23 = arith.constant 0 : index
    %c0_24 = arith.constant 0 : index
    %24 = vector.load %arg5[%c0_21, %c1_22, %c0_23, %c0_24] : memref<1x2x8x1xf32, #tpu.memory_space<vmem>>, vector<1x1x8x1xf32>
    %25 = vector.shape_cast %24 : vector<1x1x8x1xf32> to vector<8x1xf32>
    %26 = vector.shape_cast %23 : vector<8x1xf32> to vector<1x1x8x1xf32>
    tpu.vector_store %arg5[%c0_21, %c1_22, %c0_23, %c0_24], %26 {strides = array<i32>} : memref<1x2x8x1xf32, #tpu.memory_space<vmem>>, vector<1x1x8x1xf32>,
    return
  }
  func.func @transform_0(%arg0: i32, %arg1: i32) -> (i32, i32) {
    %c0_i32 = arith.constant 0 : i32
    %c0_i32_0 = arith.constant 0 : i32
    %c0_i32_1 = arith.constant 0 : i32
    return %c0_i32, %c0_i32_0 : i32, i32
  }
  func.func @transform_1(%arg0: i32, %arg1: i32) -> (i32, i32, i32) {
    %c0_i32 = arith.constant 0 : i32
    %c0_i32_0 = arith.constant 0 : i32
    return %arg0, %c0_i32, %arg1 : i32, i32, i32
  }
  func.func @transform_2(%arg0: i32, %arg1: i32) -> (i32, i32, i32) {
    %c0_i32 = arith.constant 0 : i32
    %c0_i32_0 = arith.constant 0 : i32
    return %arg0, %c0_i32, %arg1 : i32, i32, i32
  }
  func.func @transform_3(%arg0: i32, %arg1: i32) -> (i32, i32, i32, i32) {
    %c0_i32 = arith.constant 0 : i32
    %c0_i32_0 = arith.constant 0 : i32
    %c0_i32_1 = arith.constant 0 : i32
    %c0_i32_2 = arith.constant 0 : i32
    return %arg0, %c0_i32, %c0_i32_0, %c0_i32_1 : i32, i32, i32, i32
  }
}

module attributes {stable_mosaic.version = 11 : i64} {
  func.func @kernel(%arg0: i32, %arg1: i32, %arg2: memref<8x8xf32, #tpu.memory_space<vmem>>, %arg3: memref<8x1xf32, #tpu.memory_space<vmem>>, %arg4: memref<8x1xf32, #tpu.memory_space<vmem>>, %arg5: memref<1x8x256xf32, #tpu.memory_space<vmem>>, %arg6: memref<1x8x256xf32, #tpu.memory_space<vmem>>, %arg7: memref<1x2x8x1xf32, #tpu.memory_space<vmem>>) attributes {dimension_semantics = [#tpu.dimension_semantics<parallel>, #tpu.dimension_semantics<arbitrary>], iteration_bounds = array<i64: 2, 1>, scalar_prefetch = 0 : i64, scratch_operands = 0 : i64, tpu.core_type = #tpu.core_type<tc>, window_params = [{pipeline_mode = #tpu.pipeline_mode<synchronous>, transform_indices = @transform_0, window_bounds = array<i64: 8, 8>}, {pipeline_mode = #tpu.pipeline_mode<synchronous>, transform_indices = @transform_1, window_bounds = array<i64: 8, 1>}, {pipeline_mode = #tpu.pipeline_mode<synchronous>, transform_indices = @transform_2, window_bounds = array<i64: 8, 1>}, {transform_indices = @transform_3, window_bounds = array<i64: 1, 8, 256>}, {transform_indices = @transform_4, window_bounds = array<i64: 1, 8, 256>}, {transform_indices = @transform_5, window_bounds = array<i64: 1, 2, 8, 1>}]} {
    %c0 = arith.constant 0 : index
    %c0_0 = arith.constant 0 : index
    %c0_1 = arith.constant 0 : index
    %0 = vector.load %arg5[%c0, %c0_0, %c0_1] : memref<1x8x256xf32, #tpu.memory_space<vmem>>, vector<1x8x256xf32>
    %1 = vector.shape_cast %0 : vector<1x8x256xf32> to vector<8x256xf32>
    %c0_2 = arith.constant 0 : index
    %c0_3 = arith.constant 0 : index
    %2 = vector.load %arg3[%c0_2, %c0_3] : memref<8x1xf32, #tpu.memory_space<vmem>>, vector<8x1xf32>
    %3 = vector.broadcast %2 : vector<8x1xf32> to vector<8x256xf32>
    %4 = arith.mulf %1, %3 : vector<8x256xf32>
    %c0_4 = arith.constant 0 : index
    %c0_5 = arith.constant 0 : index
    %5 = vector.load %arg4[%c0_4, %c0_5] : memref<8x1xf32, #tpu.memory_space<vmem>>, vector<8x1xf32>
    %6 = vector.broadcast %5 : vector<8x1xf32> to vector<8x256xf32>
    %7 = arith.addf %4, %6 : vector<8x256xf32>
    %cst = arith.constant 0.000000e+00 : f32
    %8 = vector.broadcast %cst : f32 to vector<8x256xf32>
    %9 = arith.maximumf %7, %8 : vector<8x256xf32>
    %c0_6 = arith.constant 0 : index
    %c0_7 = arith.constant 0 : index
    %10 = vector.load %arg2[%c0_6, %c0_7] : memref<8x8xf32, #tpu.memory_space<vmem>>, vector<8x8xf32>
    %cst_8 = arith.constant dense<0.000000e+00> : vector<8x256xf32>
    %11 = tpu.matmul %10, %9, %cst_8 {dimension_numbers = #tpu.dot_dimension_numbers<[1], [0], [0], [1], [0, 0, 1, 1], [], []>} : vector<8x8xf32>, vector<8x256xf32>, vector<8x256xf32> -> vector<8x256xf32>
    %c0_9 = arith.constant 0 : index
    %c0_10 = arith.constant 0 : index
    %c0_11 = arith.constant 0 : index
    %12 = vector.load %arg6[%c0_9, %c0_10, %c0_11] : memref<1x8x256xf32, #tpu.memory_space<vmem>>, vector<1x8x256xf32>
    %13 = vector.shape_cast %12 : vector<1x8x256xf32> to vector<8x256xf32>
    %14 = vector.shape_cast %11 : vector<8x256xf32> to vector<1x8x256xf32>
    tpu.vector_store %arg6[%c0_9, %c0_10, %c0_11], %14 {strides = array<i32>} : memref<1x8x256xf32, #tpu.memory_space<vmem>>, vector<1x8x256xf32>,
    %cst_12 = arith.constant dense<0.000000e+00> : vector<8xf32>
    %15 = vector.multi_reduction <add>, %11, %cst_12 [1] : vector<8x256xf32> to vector<8xf32>
    %16 = vector.shape_cast %15 : vector<8xf32> to vector<8x1xf32>
    %17 = arith.mulf %11, %11 : vector<8x256xf32>
    %cst_13 = arith.constant dense<0.000000e+00> : vector<8xf32>
    %18 = vector.multi_reduction <add>, %17, %cst_13 [1] : vector<8x256xf32> to vector<8xf32>
    %19 = vector.shape_cast %18 : vector<8xf32> to vector<8x1xf32>
    %c0_i32 = arith.constant 0 : i32
    %20 = arith.cmpi eq, %arg1, %c0_i32 : i32
    %21 = arith.extui %20 : i1 to i32
    %c0_i32_14 = arith.constant 0 : i32
    %22 = arith.cmpi ne, %21, %c0_i32_14 : i32
    scf.if %22 {
      %cst_30 = arith.constant 0.000000e+00 : f32
      %35 = vector.broadcast %cst_30 : f32 to vector<1x2x8x1xf32>
      %c0_31 = arith.constant 0 : index
      %c0_32 = arith.constant 0 : index
      %c0_33 = arith.constant 0 : index
      %c0_34 = arith.constant 0 : index
      %36 = vector.load %arg7[%c0_31, %c0_32, %c0_33, %c0_34] : memref<1x2x8x1xf32, #tpu.memory_space<vmem>>, vector<1x2x8x1xf32>
      tpu.vector_store %arg7[%c0_31, %c0_32, %c0_33, %c0_34], %35 {strides = array<i32>} : memref<1x2x8x1xf32, #tpu.memory_space<vmem>>, vector<1x2x8x1xf32>,
    } else {
    }
    %c0_15 = arith.constant 0 : index
    %c0_16 = arith.constant 0 : index
    %c0_17 = arith.constant 0 : index
    %c0_18 = arith.constant 0 : index
    %23 = vector.load %arg7[%c0_15, %c0_16, %c0_17, %c0_18] : memref<1x2x8x1xf32, #tpu.memory_space<vmem>>, vector<1x1x8x1xf32>
    %24 = vector.shape_cast %23 : vector<1x1x8x1xf32> to vector<8x1xf32>
    %25 = arith.addf %24, %16 : vector<8x1xf32>
    %c0_19 = arith.constant 0 : index
    %c0_20 = arith.constant 0 : index
    %c0_21 = arith.constant 0 : index
    %c0_22 = arith.constant 0 : index
    %26 = vector.load %arg7[%c0_19, %c0_20, %c0_21, %c0_22] : memref<1x2x8x1xf32, #tpu.memory_space<vmem>>, vector<1x1x8x1xf32>
    %27 = vector.shape_cast %26 : vector<1x1x8x1xf32> to vector<8x1xf32>
    %28 = vector.shape_cast %25 : vector<8x1xf32> to vector<1x1x8x1xf32>
    tpu.vector_store %arg7[%c0_19, %c0_20, %c0_21, %c0_22], %28 {strides = array<i32>} : memref<1x2x8x1xf32, #tpu.memory_space<vmem>>, vector<1x1x8x1xf32>,
    %c0_23 = arith.constant 0 : index
    %c1 = arith.constant 1 : index
    %c0_24 = arith.constant 0 : index
    %c0_25 = arith.constant 0 : index
    %29 = vector.load %arg7[%c0_23, %c1, %c0_24, %c0_25] : memref<1x2x8x1xf32, #tpu.memory_space<vmem>>, vector<1x1x8x1xf32>
    %30 = vector.shape_cast %29 : vector<1x1x8x1xf32> to vector<8x1xf32>
    %31 = arith.addf %30, %19 : vector<8x1xf32>
    %c0_26 = arith.constant 0 : index
    %c1_27 = arith.constant 1 : index
    %c0_28 = arith.constant 0 : index
    %c0_29 = arith.constant 0 : index
    %32 = vector.load %arg7[%c0_26, %c1_27, %c0_28, %c0_29] : memref<1x2x8x1xf32, #tpu.memory_space<vmem>>, vector<1x1x8x1xf32>
    %33 = vector.shape_cast %32 : vector<1x1x8x1xf32> to vector<8x1xf32>
    %34 = vector.shape_cast %31 : vector<8x1xf32> to vector<1x1x8x1xf32>
    tpu.vector_store %arg7[%c0_26, %c1_27, %c0_28, %c0_29], %34 {strides = array<i32>} : memref<1x2x8x1xf32, #tpu.memory_space<vmem>>, vector<1x1x8x1xf32>,
    return
  }
  func.func @transform_0(%arg0: i32, %arg1: i32) -> (i32, i32) {
    %c0_i32 = arith.constant 0 : i32
    %c0_i32_0 = arith.constant 0 : i32
    %c0_i32_1 = arith.constant 0 : i32
    return %c0_i32, %c0_i32_0 : i32, i32
  }
  func.func @transform_1(%arg0: i32, %arg1: i32) -> (i32, i32) {
    %c0_i32 = arith.constant 0 : i32
    %c0_i32_0 = arith.constant 0 : i32
    %c0_i32_1 = arith.constant 0 : i32
    return %c0_i32, %c0_i32_0 : i32, i32
  }
  func.func @transform_2(%arg0: i32, %arg1: i32) -> (i32, i32) {
    %c0_i32 = arith.constant 0 : i32
    %c0_i32_0 = arith.constant 0 : i32
    %c0_i32_1 = arith.constant 0 : i32
    return %c0_i32, %c0_i32_0 : i32, i32
  }
  func.func @transform_3(%arg0: i32, %arg1: i32) -> (i32, i32, i32) {
    %c0_i32 = arith.constant 0 : i32
    %c0_i32_0 = arith.constant 0 : i32
    return %arg0, %c0_i32, %arg1 : i32, i32, i32
  }
  func.func @transform_4(%arg0: i32, %arg1: i32) -> (i32, i32, i32) {
    %c0_i32 = arith.constant 0 : i32
    %c0_i32_0 = arith.constant 0 : i32
    return %arg0, %c0_i32, %arg1 : i32, i32, i32
  }
  func.func @transform_5(%arg0: i32, %arg1: i32) -> (i32, i32, i32, i32) {
    %c0_i32 = arith.constant 0 : i32
    %c0_i32_0 = arith.constant 0 : i32
    %c0_i32_1 = arith.constant 0 : i32
    %c0_i32_2 = arith.constant 0 : i32
    return %arg0, %c0_i32, %c0_i32_0, %c0_i32_1 : i32, i32, i32, i32
  }
}

module attributes {stable_mosaic.version = 11 : i64} {
  func.func @kernel(%arg0: i32, %arg1: i32, %arg2: memref<32x8xf32, #tpu.memory_space<vmem>>, %arg3: memref<8x1xf32, #tpu.memory_space<vmem>>, %arg4: memref<8x1xf32, #tpu.memory_space<vmem>>, %arg5: memref<1x8x256xf32, #tpu.memory_space<vmem>>, %arg6: memref<1x32x256xf32, #tpu.memory_space<vmem>>, %arg7: memref<1x2x32x1xf32, #tpu.memory_space<vmem>>) attributes {dimension_semantics = [#tpu.dimension_semantics<parallel>, #tpu.dimension_semantics<arbitrary>], iteration_bounds = array<i64: 2, 1>, scalar_prefetch = 0 : i64, scratch_operands = 0 : i64, tpu.core_type = #tpu.core_type<tc>, window_params = [{pipeline_mode = #tpu.pipeline_mode<synchronous>, transform_indices = @transform_0, window_bounds = array<i64: 32, 8>}, {pipeline_mode = #tpu.pipeline_mode<synchronous>, transform_indices = @transform_1, window_bounds = array<i64: 8, 1>}, {pipeline_mode = #tpu.pipeline_mode<synchronous>, transform_indices = @transform_2, window_bounds = array<i64: 8, 1>}, {transform_indices = @transform_3, window_bounds = array<i64: 1, 8, 256>}, {transform_indices = @transform_4, window_bounds = array<i64: 1, 32, 256>}, {transform_indices = @transform_5, window_bounds = array<i64: 1, 2, 32, 1>}]} {
    %c0 = arith.constant 0 : index
    %c0_0 = arith.constant 0 : index
    %c0_1 = arith.constant 0 : index
    %0 = vector.load %arg5[%c0, %c0_0, %c0_1] : memref<1x8x256xf32, #tpu.memory_space<vmem>>, vector<1x8x256xf32>
    %1 = vector.shape_cast %0 : vector<1x8x256xf32> to vector<8x256xf32>
    %c0_2 = arith.constant 0 : index
    %c0_3 = arith.constant 0 : index
    %2 = vector.load %arg3[%c0_2, %c0_3] : memref<8x1xf32, #tpu.memory_space<vmem>>, vector<8x1xf32>
    %3 = vector.broadcast %2 : vector<8x1xf32> to vector<8x256xf32>
    %4 = arith.mulf %1, %3 : vector<8x256xf32>
    %c0_4 = arith.constant 0 : index
    %c0_5 = arith.constant 0 : index
    %5 = vector.load %arg4[%c0_4, %c0_5] : memref<8x1xf32, #tpu.memory_space<vmem>>, vector<8x1xf32>
    %6 = vector.broadcast %5 : vector<8x1xf32> to vector<8x256xf32>
    %7 = arith.addf %4, %6 : vector<8x256xf32>
    %cst = arith.constant 0.000000e+00 : f32
    %8 = vector.broadcast %cst : f32 to vector<8x256xf32>
    %9 = arith.maximumf %7, %8 : vector<8x256xf32>
    %c0_6 = arith.constant 0 : index
    %c0_7 = arith.constant 0 : index
    %10 = vector.load %arg2[%c0_6, %c0_7] : memref<32x8xf32, #tpu.memory_space<vmem>>, vector<32x8xf32>
    %cst_8 = arith.constant dense<0.000000e+00> : vector<32x256xf32>
    %11 = tpu.matmul %10, %9, %cst_8 {dimension_numbers = #tpu.dot_dimension_numbers<[1], [0], [0], [1], [0, 0, 1, 1], [], []>} : vector<32x8xf32>, vector<8x256xf32>, vector<32x256xf32> -> vector<32x256xf32>
    %c0_9 = arith.constant 0 : index
    %c0_10 = arith.constant 0 : index
    %c0_11 = arith.constant 0 : index
    %12 = vector.load %arg6[%c0_9, %c0_10, %c0_11] : memref<1x32x256xf32, #tpu.memory_space<vmem>>, vector<1x32x256xf32>
    %13 = vector.shape_cast %12 : vector<1x32x256xf32> to vector<32x256xf32>
    %14 = vector.shape_cast %11 : vector<32x256xf32> to vector<1x32x256xf32>
    tpu.vector_store %arg6[%c0_9, %c0_10, %c0_11], %14 {strides = array<i32>} : memref<1x32x256xf32, #tpu.memory_space<vmem>>, vector<1x32x256xf32>,
    %cst_12 = arith.constant dense<0.000000e+00> : vector<32xf32>
    %15 = vector.multi_reduction <add>, %11, %cst_12 [1] : vector<32x256xf32> to vector<32xf32>
    %16 = vector.shape_cast %15 : vector<32xf32> to vector<32x1xf32>
    %17 = arith.mulf %11, %11 : vector<32x256xf32>
    %cst_13 = arith.constant dense<0.000000e+00> : vector<32xf32>
    %18 = vector.multi_reduction <add>, %17, %cst_13 [1] : vector<32x256xf32> to vector<32xf32>
    %19 = vector.shape_cast %18 : vector<32xf32> to vector<32x1xf32>
    %c0_i32 = arith.constant 0 : i32
    %20 = arith.cmpi eq, %arg1, %c0_i32 : i32
    %21 = arith.extui %20 : i1 to i32
    %c0_i32_14 = arith.constant 0 : i32
    %22 = arith.cmpi ne, %21, %c0_i32_14 : i32
    scf.if %22 {
      %cst_30 = arith.constant 0.000000e+00 : f32
      %35 = vector.broadcast %cst_30 : f32 to vector<1x2x32x1xf32>
      %c0_31 = arith.constant 0 : index
      %c0_32 = arith.constant 0 : index
      %c0_33 = arith.constant 0 : index
      %c0_34 = arith.constant 0 : index
      %36 = vector.load %arg7[%c0_31, %c0_32, %c0_33, %c0_34] : memref<1x2x32x1xf32, #tpu.memory_space<vmem>>, vector<1x2x32x1xf32>
      tpu.vector_store %arg7[%c0_31, %c0_32, %c0_33, %c0_34], %35 {strides = array<i32>} : memref<1x2x32x1xf32, #tpu.memory_space<vmem>>, vector<1x2x32x1xf32>,
    } else {
    }
    %c0_15 = arith.constant 0 : index
    %c0_16 = arith.constant 0 : index
    %c0_17 = arith.constant 0 : index
    %c0_18 = arith.constant 0 : index
    %23 = vector.load %arg7[%c0_15, %c0_16, %c0_17, %c0_18] : memref<1x2x32x1xf32, #tpu.memory_space<vmem>>, vector<1x1x32x1xf32>
    %24 = vector.shape_cast %23 : vector<1x1x32x1xf32> to vector<32x1xf32>
    %25 = arith.addf %24, %16 : vector<32x1xf32>
    %c0_19 = arith.constant 0 : index
    %c0_20 = arith.constant 0 : index
    %c0_21 = arith.constant 0 : index
    %c0_22 = arith.constant 0 : index
    %26 = vector.load %arg7[%c0_19, %c0_20, %c0_21, %c0_22] : memref<1x2x32x1xf32, #tpu.memory_space<vmem>>, vector<1x1x32x1xf32>
    %27 = vector.shape_cast %26 : vector<1x1x32x1xf32> to vector<32x1xf32>
    %28 = vector.shape_cast %25 : vector<32x1xf32> to vector<1x1x32x1xf32>
    tpu.vector_store %arg7[%c0_19, %c0_20, %c0_21, %c0_22], %28 {strides = array<i32>} : memref<1x2x32x1xf32, #tpu.memory_space<vmem>>, vector<1x1x32x1xf32>,
    %c0_23 = arith.constant 0 : index
    %c1 = arith.constant 1 : index
    %c0_24 = arith.constant 0 : index
    %c0_25 = arith.constant 0 : index
    %29 = vector.load %arg7[%c0_23, %c1, %c0_24, %c0_25] : memref<1x2x32x1xf32, #tpu.memory_space<vmem>>, vector<1x1x32x1xf32>
    %30 = vector.shape_cast %29 : vector<1x1x32x1xf32> to vector<32x1xf32>
    %31 = arith.addf %30, %19 : vector<32x1xf32>
    %c0_26 = arith.constant 0 : index
    %c1_27 = arith.constant 1 : index
    %c0_28 = arith.constant 0 : index
    %c0_29 = arith.constant 0 : index
    %32 = vector.load %arg7[%c0_26, %c1_27, %c0_28, %c0_29] : memref<1x2x32x1xf32, #tpu.memory_space<vmem>>, vector<1x1x32x1xf32>
    %33 = vector.shape_cast %32 : vector<1x1x32x1xf32> to vector<32x1xf32>
    %34 = vector.shape_cast %31 : vector<32x1xf32> to vector<1x1x32x1xf32>
    tpu.vector_store %arg7[%c0_26, %c1_27, %c0_28, %c0_29], %34 {strides = array<i32>} : memref<1x2x32x1xf32, #tpu.memory_space<vmem>>, vector<1x1x32x1xf32>,
    return
  }
  func.func @transform_0(%arg0: i32, %arg1: i32) -> (i32, i32) {
    %c0_i32 = arith.constant 0 : i32
    %c0_i32_0 = arith.constant 0 : i32
    %c0_i32_1 = arith.constant 0 : i32
    return %c0_i32, %c0_i32_0 : i32, i32
  }
  func.func @transform_1(%arg0: i32, %arg1: i32) -> (i32, i32) {
    %c0_i32 = arith.constant 0 : i32
    %c0_i32_0 = arith.constant 0 : i32
    %c0_i32_1 = arith.constant 0 : i32
    return %c0_i32, %c0_i32_0 : i32, i32
  }
  func.func @transform_2(%arg0: i32, %arg1: i32) -> (i32, i32) {
    %c0_i32 = arith.constant 0 : i32
    %c0_i32_0 = arith.constant 0 : i32
    %c0_i32_1 = arith.constant 0 : i32
    return %c0_i32, %c0_i32_0 : i32, i32
  }
  func.func @transform_3(%arg0: i32, %arg1: i32) -> (i32, i32, i32) {
    %c0_i32 = arith.constant 0 : i32
    %c0_i32_0 = arith.constant 0 : i32
    return %arg0, %c0_i32, %arg1 : i32, i32, i32
  }
  func.func @transform_4(%arg0: i32, %arg1: i32) -> (i32, i32, i32) {
    %c0_i32 = arith.constant 0 : i32
    %c0_i32_0 = arith.constant 0 : i32
    return %arg0, %c0_i32, %arg1 : i32, i32, i32
  }
  func.func @transform_5(%arg0: i32, %arg1: i32) -> (i32, i32, i32, i32) {
    %c0_i32 = arith.constant 0 : i32
    %c0_i32_0 = arith.constant 0 : i32
    %c0_i32_1 = arith.constant 0 : i32
    %c0_i32_2 = arith.constant 0 : i32
    return %arg0, %c0_i32, %c0_i32_0, %c0_i32_1 : i32, i32, i32, i32
  }
}

module attributes {stable_mosaic.version = 11 : i64} {
  func.func @kernel(%arg0: i32, %arg1: i32, %arg2: memref<32x1xf32, #tpu.memory_space<vmem>>, %arg3: memref<32x1xf32, #tpu.memory_space<vmem>>, %arg4: memref<1x32x256xf32, #tpu.memory_space<vmem>>, %arg5: memref<1x32x256xf32, #tpu.memory_space<vmem>>) attributes {dimension_semantics = [#tpu.dimension_semantics<parallel>, #tpu.dimension_semantics<parallel>], iteration_bounds = array<i64: 2, 1>, scalar_prefetch = 0 : i64, scratch_operands = 0 : i64, tpu.core_type = #tpu.core_type<tc>, window_params = [{pipeline_mode = #tpu.pipeline_mode<synchronous>, transform_indices = @transform_0, window_bounds = array<i64: 32, 1>}, {pipeline_mode = #tpu.pipeline_mode<synchronous>, transform_indices = @transform_1, window_bounds = array<i64: 32, 1>}, {transform_indices = @transform_2, window_bounds = array<i64: 1, 32, 256>}, {transform_indices = @transform_3, window_bounds = array<i64: 1, 32, 256>}]} {
    %c0 = arith.constant 0 : index
    %c0_0 = arith.constant 0 : index
    %c0_1 = arith.constant 0 : index
    %0 = vector.load %arg4[%c0, %c0_0, %c0_1] : memref<1x32x256xf32, #tpu.memory_space<vmem>>, vector<1x32x256xf32>
    %1 = vector.shape_cast %0 : vector<1x32x256xf32> to vector<32x256xf32>
    %c0_2 = arith.constant 0 : index
    %c0_3 = arith.constant 0 : index
    %2 = vector.load %arg2[%c0_2, %c0_3] : memref<32x1xf32, #tpu.memory_space<vmem>>, vector<32x1xf32>
    %3 = vector.broadcast %2 : vector<32x1xf32> to vector<32x256xf32>
    %4 = arith.mulf %1, %3 : vector<32x256xf32>
    %c0_4 = arith.constant 0 : index
    %c0_5 = arith.constant 0 : index
    %5 = vector.load %arg3[%c0_4, %c0_5] : memref<32x1xf32, #tpu.memory_space<vmem>>, vector<32x1xf32>
    %6 = vector.broadcast %5 : vector<32x1xf32> to vector<32x256xf32>
    %7 = arith.addf %4, %6 : vector<32x256xf32>
    %cst = arith.constant 0.000000e+00 : f32
    %8 = vector.broadcast %cst : f32 to vector<32x256xf32>
    %9 = arith.maximumf %7, %8 : vector<32x256xf32>
    %c0_6 = arith.constant 0 : index
    %c0_7 = arith.constant 0 : index
    %c0_8 = arith.constant 0 : index
    %10 = vector.load %arg5[%c0_6, %c0_7, %c0_8] : memref<1x32x256xf32, #tpu.memory_space<vmem>>, vector<1x32x256xf32>
    %11 = vector.shape_cast %10 : vector<1x32x256xf32> to vector<32x256xf32>
    %12 = vector.shape_cast %9 : vector<32x256xf32> to vector<1x32x256xf32>
    tpu.vector_store %arg5[%c0_6, %c0_7, %c0_8], %12 {strides = array<i32>} : memref<1x32x256xf32, #tpu.memory_space<vmem>>, vector<1x32x256xf32>,
    return
  }
  func.func @transform_0(%arg0: i32, %arg1: i32) -> (i32, i32) {
    %c0_i32 = arith.constant 0 : i32
    %c0_i32_0 = arith.constant 0 : i32
    %c0_i32_1 = arith.constant 0 : i32
    return %c0_i32, %c0_i32_0 : i32, i32
  }
  func.func @transform_1(%arg0: i32, %arg1: i32) -> (i32, i32) {
    %c0_i32 = arith.constant 0 : i32
    %c0_i32_0 = arith.constant 0 : i32
    %c0_i32_1 = arith.constant 0 : i32
    return %c0_i32, %c0_i32_0 : i32, i32
  }
  func.func @transform_2(%arg0: i32, %arg1: i32) -> (i32, i32, i32) {
    %c0_i32 = arith.constant 0 : i32
    %c0_i32_0 = arith.constant 0 : i32
    return %arg0, %c0_i32, %arg1 : i32, i32, i32
  }
  func.func @transform_3(%arg0: i32, %arg1: i32) -> (i32, i32, i32) {
    %c0_i32 = arith.constant 0 : i32
    %c0_i32_0 = arith.constant 0 : i32
    return %arg0, %c0_i32, %arg1 : i32, i32, i32
  }
}

</mosaic_0001>

<bundles_post_ra>
// kernel: res_layer_forward.4
= control target key start
LH: loop header
LB: loop body
LE: loop exit
PB: predicated region body
PF: predicated region fallthrough
CT: control target
= control target key end

     0   :  { %s544_s12 = smov 0   ;;  %s546_s13 = smov 0   ;;  %s587_s0 = inlined_call_operand.vmem [shape: f32[8,4], index: 0, kind: input, shape index: {}]   ;;  %s588_s1 = inlined_call_operand.vmem [shape: f32[2,4,256], index: 1, kind: input, shape index: {}]   ;;  %s589_s2 = inlined_call_operand.vmem [shape: f32[2,8,256], index: 2, kind: output, shape index: {0}]   ;;  %s590_s3 = inlined_call_operand.vmem [shape: f32[2,2,8,1], index: 3, kind: output, shape index: {1}]  }
   0x1   :  { %s548_s14 = smov 0  }
   0x2 LB: > { %s26_s15 = sadd.s32 1, %s517_s13  ;;  %p456_p0 = scmp.ge.s32.totalorder %s521_s14, 1  ;;  %s521_s14 = sphi %s548_s14, %s14_s14   ;;  %s517_s13 = sphi %s546_s13, %s592_s13   ;;  %s513_s12 = sphi %s544_s12, %s591_s12  }
   0x3   : > { %p28_p1 = scmp.ge.s32.totalorder %s26_s15, 2  ;;  %p161_p2 = scmp.lt.s32.totalorder %s521_s14, 3 }
   0x5   : > { %s594_s15 = smov (%p28_p1, %s26_s15), 0  ;;  %p162_p3 = pnand %p456_p0, %p161_p2 }
   0x6   : > { %p199_p4 = scmp.lt.s32.totalorder (!%p162_p3), %s513_s12, 1  ;;  %v523_v0 = vmov (!%p162_p3), 0.0   ;;  %vm231_vm0 = vcmask (!%p162_p3), 1043456   ;;  %v224_v3 = vld [vmem:[%s587_s0] sm:$0xff] (!%p162_p3)  ;;  %vm227_vm1 = vcmask (!%p162_p3), 31744   ;;  %vm321_vm2 = vcmask (!%p162_p3), 7168  }
   0x7   : > { %165 = sbr.rel (%p162_p3) target bundleno = 386 (0x182), region = 28  ;;  %300 = vmatprep.mubr.f32.mxu0 (!%p162_p3), %v523_v0 }
   0xe   : > { %s596_s12 = smov (!%p199_p4, %s513_s12), 1 }
   0xf   : > { %s470_s16 = sshll.u32 %s596_s12, 3  ;;  %s471_s22 = sshll.u32 %s596_s12, 4 }
  0x10   : > { %s206_s19 = scalar_lea.vmem %s588_s1, %s470_s16  ;;  %s222_s25 = scalar_lea.vmem %s590_s3, %s471_s22 }
  0x11   : > { %v223_v1 = vld [vmem:[%s206_s19] sm:$0xff]  ;;  %322 = vst.msk [vmem:[%s222_s25] sm:$0xff] %vm321_vm2, %v523_v0  ;;  %323 = vst.msk [vmem:[%s222_s25 + $0x8] sm:$0xff] %vm321_vm2, %v523_v0  ;;  %s216_s28 = scalar_lea.vmem %s589_s2, %s471_s22 }
  0x12   : > { %v226_v2 = vcombine.high %v223_v1, %v223_v1 }
  0x14   : > { %463 = vmatprep.subr.msk.mxu0 %vm231_vm0, %v226_v2 }
  0x15   : > { %464 = vmatpush1.msk.msra.mxu0 %vm231_vm0, %v223_v1 }
  0x16   : > { %465 = vmatmul.mubr.msk.f32.vlgmr.msra.gmra.mrb[0].mxu0 %vm227_vm1, %v224_v3 }
  0x18   : > { %v324_v10 = vld [vmem:[%s222_s25] sm:$0xff]  ;;  %v466_v13 = vld [vmem:[%s222_s25 + $0x8] sm:$0xff] }
  0xe9   : > { %v302_v4 = vpop.f32.mrb[0].mxu0 }
  0xea   : > { %v304_v5 = vpop.f32.mrb[1].mxu0  ;;  %307 = vst [vmem:[%s216_s28] sm:$0xff] %v302_v4  ;;  %v312_v6 = vmul.f32 %v302_v4, %v302_v4 }
  0xeb   : > { %308 = vst [vmem:[%s216_s28 + $0x8] sm:$0xff] %v304_v5  ;;  %v313_v7 = vmul.f32 %v304_v5, %v304_v5  ;;  %v309_v8 = vadd.f32 %v304_v5, %v302_v4 }
  0xed   : > { %310 = vadd.xlane.f32.xlu0 %v309_v8  ;;  %v314_v9 = vadd.f32 %v313_v7, %v312_v6 }
  0xf1   : > { %315 = vadd.xlane.f32.xlu0 %v314_v9 }
 0x17a   : > { %v311_v11 = vpop.xlane.xlu0 %310 }
 0x17b   : > { %v325_v12 = vadd.f32 %v324_v10, %v311_v11 }
 0x17d   : > { %327 = vst.msk [vmem:[%s222_s25] sm:$0xff] %vm321_vm2, %v325_v12 }
 0x17e   : > { %v316_v14 = vpop.xlane.xlu0 %315 }
 0x17f   : > { %v330_v15 = vadd.f32 %v466_v13, %v316_v14 }
 0x181   : > { %467 = vst.msk [vmem:[%s222_s25 + $0x8] sm:$0xff] %vm321_vm2, %v330_v15 }
 0x182 PF: > { %s14_s14 = sadd.s32 1, %s521_s14   ;;  %s591_s12 = smov %s517_s13 }
 0x183   : > { %p11_p5 = scmp.ge.s32.totalorder %s14_s14, 4   ;;  %s592_s13 = smov %s594_s15 }
 0x185   :  { %13 = sbr.rel (!%p11_p5) target bundleno = 2 (0x2), region = 75 }

// kernel: res_layer_forward.5
= control target key start
LH: loop header
LB: loop body
LE: loop exit
PB: predicated region body
PF: predicated region fallthrough
CT: control target
= control target key end

     0   :  { %s620_s18 = smov 0   ;;  %s622_s19 = smov 0   ;;  %s677_s0 = inlined_call_operand.vmem [shape: f32[8,8], index: 0, kind: input, shape index: {}]   ;;  %s678_s1 = inlined_call_operand.vmem [shape: f32[8,1], index: 1, kind: input, shape index: {}]   ;;  %s679_s2 = inlined_call_operand.vmem [shape: f32[8,1], index: 2, kind: input, shape index: {}]   ;;  %s680_s3 = inlined_call_operand.vmem [shape: f32[2,8,256], index: 3, kind: input, shape index: {}]   ;;  %s681_s4 = inlined_call_operand.vmem [shape: f32[2,8,256], index: 4, kind: output, shape index: {0}]   ;;  %s682_s5 = inlined_call_operand.vmem [shape: f32[2,2,8,1], index: 5, kind: output, shape index: {1}]  }
   0x1   :  { %s624_s20 = smov 0  }
   0x2 LB: > { %s28_s21 = sadd.s32 1, %s582_s19  ;;  %p522_p0 = scmp.ge.s32.totalorder %s586_s20, 1  ;;  %s586_s20 = sphi %s624_s20, %s16_s20   ;;  %s582_s19 = sphi %s622_s19, %s684_s19   ;;  %s578_s18 = sphi %s620_s18, %s683_s18  }
   0x3   : > { %p30_p1 = scmp.ge.s32.totalorder %s28_s21, 2  ;;  %p211_p2 = scmp.lt.s32.totalorder %s586_s20, 3 }
   0x5   : > { %s686_s21 = smov (%p30_p1, %s28_s21), 0  ;;  %p212_p3 = pnand %p522_p0, %p211_p2 }
   0x6   : > { %v279_v0 = vld [vmem:[%s678_s1] sm:$0xff] (!%p212_p3)  ;;  %p253_p4 = scmp.lt.s32.totalorder (!%p212_p3), %s578_s18, 1  ;;  %v588_v1 = vmov (!%p212_p3), 0   ;;  %v589_v3 = vmov (!%p212_p3), 0.0   ;;  %vm387_vm0 = vcmask (!%p212_p3), 7168   ;;  %vm298_vm1 = vcmask (!%p212_p3), 64512  }
   0x7   : > { %215 = sbr.rel (%p212_p3) target bundleno = 510 (0x1fe), region = 36  ;;  %563 = vset.pattern.permute.xlu0 (!%p212_p3), %v588_v1  ;;  %v287_v2 = vld [vmem:[%s679_s2] sm:$0xff] (!%p212_p3)  ;;  %366 = vmatprep.mubr.f32.mxu0 (!%p212_p3), %v589_v3 }
   0x8   : > { %282 = vperm.xlu0 (!%p212_p3), %563, %v279_v0   ;;  %v297_v14 = vld [vmem:[%s677_s0] sm:$0xff] (!%p212_p3) }
   0xc   : > { %290 = vperm.xlu0 (!%p212_p3), %563, %v287_v2  }
   0xe   : > { %s688_s18 = smov (!%p253_p4, %s578_s18), 1 }
   0xf   : > { %s534_s26 = sshll.u32 %s688_s18, 4 }
  0x10   : > { %s647_s29 = scalar_lea.vmem %s682_s5, %s534_s26  ;;  %s260_s7 = scalar_lea.vmem %s680_s3, %s534_s26 }
  0x11   : > { %388 = vst.msk [vmem:[%s647_s29] sm:$0xff] %vm387_vm0, %v589_v3  ;;  %389 = vst.msk [vmem:[%s647_s29 + $0x8] sm:$0xff] %vm387_vm0, %v589_v3  ;;  %v277_v5 = vld [vmem:[%s260_s7] sm:$0xff]  ;;  %v278_v6 = vld [vmem:[%s260_s7 + $0x8] sm:$0xff]  ;;  %s270_s12 = scalar_lea.vmem %s681_s4, %s534_s26 }
  0x18   : > { %v390_v21 = vld [vmem:[%s647_s29] sm:$0xff]  ;;  %v530_v24 = vld [vmem:[%s647_s29 + $0x8] sm:$0xff] }
  0x87   : > { %v283_v4 = vpop.permute.xlu0 %282 }
  0x88   : > { %v285_v7 = vmul.f32 %v283_v4, %v277_v5  ;;  %v286_v8 = vmul.f32 %v283_v4, %v278_v6 }
  0x8b   : > { %v291_v9 = vpop.permute.xlu0 %290 }
  0x8c   : > { %v293_v10 = vadd.f32 %v291_v9, %v285_v7  ;;  %v294_v11 = vadd.f32 %v291_v9, %v286_v8 }
  0x8e   : > { %v295_v12 = vmax.f32 %v293_v10, 0.0  ;;  %v296_v13 = vmax.f32 %v294_v11, 0.0 }
  0x90   : > { %302 = vmatprep.subr.mxu0 %v296_v13 }
  0x91   : > { %303 = vmatpush1.msra.mxu0 %v295_v12 }
  0x92   : > { %529 = vmatmul.mubr.msk.f32.vlgmr.msra.gmra.mrb[0].mxu0 %vm298_vm1, %v297_v14 }
 0x165   : > { %v368_v15 = vpop.f32.mrb[0].mxu0 }
 0x166   : > { %v370_v16 = vpop.f32.mrb[1].mxu0  ;;  %373 = vst [vmem:[%s270_s12] sm:$0xff] %v368_v15  ;;  %v378_v17 = vmul.f32 %v368_v15, %v368_v15 }
 0x167   : > { %374 = vst [vmem:[%s270_s12 + $0x8] sm:$0xff] %v370_v16  ;;  %v379_v18 = vmul.f32 %v370_v16, %v370_v16  ;;  %v375_v19 = vadd.f32 %v370_v16, %v368_v15 }
 0x169   : > { %376 = vadd.xlane.f32.xlu1 %v375_v19  ;;  %v380_v20 = vadd.f32 %v379_v18, %v378_v17 }
 0x16d   : > { %381 = vadd.xlane.f32.xlu1 %v380_v20 }
 0x1f6   : > { %v377_v22 = vpop.xlane.xlu1 %376 }
 0x1f7   : > { %v391_v23 = vadd.f32 %v390_v21, %v377_v22 }
 0x1f9   : > { %393 = vst.msk [vmem:[%s647_s29] sm:$0xff] %vm387_vm0, %v391_v23 }
 0x1fa   : > { %v382_v25 = vpop.xlane.xlu1 %381 }
 0x1fb   : > { %v396_v26 = vadd.f32 %v530_v24, %v382_v25 }
 0x1fd   : > { %531 = vst.msk [vmem:[%s647_s29 + $0x8] sm:$0xff] %vm387_vm0, %v396_v26 }
 0x1fe PF: > { %s16_s20 = sadd.s32 1, %s586_s20   ;;  %s683_s18 = smov %s582_s19 }
 0x1ff   : > { %p13_p5 = scmp.ge.s32.totalorder %s16_s20, 4   ;;  %s684_s19 = smov %s686_s21 }
 0x201   :  { %15 = sbr.rel (!%p13_p5) target bundleno = 2 (0x2), region = 83 }

// kernel: res_layer_forward.6
= control target key start
LH: loop header
LB: loop body
LE: loop exit
PB: predicated region body
PF: predicated region fallthrough
CT: control target
= control target key end

     0   :  { %s715_s18 = smov 0   ;;  %s717_s19 = smov 0   ;;  %s815_s0 = inlined_call_operand.vmem [shape: f32[32,8], index: 0, kind: input, shape index: {}]   ;;  %s816_s1 = inlined_call_operand.vmem [shape: f32[8,1], index: 1, kind: input, shape index: {}]   ;;  %s817_s2 = inlined_call_operand.vmem [shape: f32[8,1], index: 2, kind: input, shape index: {}]   ;;  %s818_s3 = inlined_call_operand.vmem [shape: f32[2,8,256], index: 3, kind: input, shape index: {}]   ;;  %s819_s4 = inlined_call_operand.vmem [shape: f32[2,32,256], index: 4, kind: output, shape index: {0}]   ;;  %s820_s5 = inlined_call_operand.vmem [shape: f32[2,2,32,1], index: 5, kind: output, shape index: {1}]  }
   0x1   :  { %s719_s20 = smov 0  }
   0x2 LB: > { %s28_s21 = sadd.s32 1, %s677_s19  ;;  %p606_p0 = scmp.ge.s32.totalorder %s681_s20, 1  ;;  %s681_s20 = sphi %s719_s20, %s16_s20   ;;  %s677_s19 = sphi %s717_s19, %s822_s19   ;;  %s673_s18 = sphi %s715_s18, %s821_s18  }
   0x3   : > { %p30_p1 = scmp.ge.s32.totalorder %s28_s21, 2  ;;  %p211_p2 = scmp.lt.s32.totalorder %s681_s20, 3 }
   0x5   : > { %s824_s21 = smov (%p30_p1, %s28_s21), 0  ;;  %p212_p3 = pnand %p606_p0, %p211_p2 }
   0x6   : > { %v279_v0 = vld [vmem:[%s816_s1] sm:$0xff] (!%p212_p3)  ;;  %v683_v1 = vmov (!%p212_p3), 0   ;;  %v684_v3 = vmov (!%p212_p3), 0.0   ;;  %p253_p4 = scmp.lt.s32.totalorder (!%p212_p3), %s673_s18, 1  ;;  %vm301_vm0 = vcmask (!%p212_p3), 64512   ;;  %v299_v15 = vld [vmem:[%s815_s0 + $0x10] sm:$0xff] (!%p212_p3) }
   0x7   : > { %215 = sbr.rel (%p212_p3) target bundleno = 530 (0x212), region = 36  ;;  %658 = vset.pattern.permute.xlu0 (!%p212_p3), %v683_v1  ;;  %v287_v2 = vld [vmem:[%s817_s2] sm:$0xff] (!%p212_p3)  ;;  %378 = vmatprep.mubr.f32.mxu0 (!%p212_p3), %v684_v3  ;;  %v298_v16 = vld [vmem:[%s815_s0 + $0x8] sm:$0xff] (!%p212_p3)  ;;  %v300_v17 = vld [vmem:[%s815_s0 + $0x18] sm:$0xff] (!%p212_p3)  ;;  %vm447_vm1 = vcmask (!%p212_p3), 7168  }
   0x8   : > { %282 = vperm.xlu0 (!%p212_p3), %658, %v279_v0   ;;  %390 = vmatprep.mubr.f32.mxu1 (!%p212_p3), %v684_v3  ;;  %v297_v14 = vld [vmem:[%s815_s0] sm:$0xff] (!%p212_p3) }
   0xc   : > { %290 = vperm.xlu0 (!%p212_p3), %658, %v287_v2  }
   0xe   : > { %s826_s18 = smov (!%p253_p4, %s673_s18), 1 }
   0xf   : > { %s627_s26 = sshll.u32 %s826_s18, 4  ;;  %s628_s13 = sshll.u32 %s826_s18, 6 }
  0x10   : > { %s260_s29 = scalar_lea.vmem %s818_s3, %s627_s26  ;;  %s761_s16 = scalar_lea.vmem %s820_s5, %s628_s13 }
  0x11   : > { %v277_v5 = vld [vmem:[%s260_s29] sm:$0xff]  ;;  %v278_v6 = vld [vmem:[%s260_s29 + $0x8] sm:$0xff]  ;;  %448 = vst.msk [vmem:[%s761_s16] sm:$0xff] %vm447_vm1, %v684_v3  ;;  %449 = vst.msk [vmem:[%s761_s16 + $0x8] sm:$0xff] %vm447_vm1, %v684_v3  ;;  %s270_s22 = scalar_lea.vmem %s819_s4, %s628_s13 }
  0x12   : > { %450 = vst.msk [vmem:[%s761_s16 + $0x10] sm:$0xff] %vm447_vm1, %v684_v3  ;;  %451 = vst.msk [vmem:[%s761_s16 + $0x18] sm:$0xff] %vm447_vm1, %v684_v3 }
  0x13   : > { %452 = vst.msk [vmem:[%s761_s16 + $0x20] sm:$0xff] %vm447_vm1, %v684_v3  ;;  %453 = vst.msk [vmem:[%s761_s16 + $0x28] sm:$0xff] %vm447_vm1, %v684_v3 }
  0x14   : > { %454 = vst.msk [vmem:[%s761_s16 + $0x30] sm:$0xff] %vm447_vm1, %v684_v3  ;;  %455 = vst.msk [vmem:[%s761_s16 + $0x38] sm:$0xff] %vm447_vm1, %v684_v3 }
  0x18   : > { %v456_v42 = vld [vmem:[%s761_s16] sm:$0xff]  ;;  %v457_v54 = vld [vmem:[%s761_s16 + $0x8] sm:$0xff] }
  0x19   : > { %v458_v43 = vld [vmem:[%s761_s16 + $0x10] sm:$0xff]  ;;  %v459_v57 = vld [vmem:[%s761_s16 + $0x18] sm:$0xff] }
  0x1a   : > { %v617_v48 = vld [vmem:[%s761_s16 + $0x20] sm:$0xff]  ;;  %v618_v60 = vld [vmem:[%s761_s16 + $0x28] sm:$0xff] }
  0x1b   : > { %v619_v51 = vld [vmem:[%s761_s16 + $0x30] sm:$0xff]  ;;  %v620_v63 = vld [vmem:[%s761_s16 + $0x38] sm:$0xff] }
  0x87   : > { %v283_v4 = vpop.permute.xlu0 %282 }
  0x88   : > { %v285_v7 = vmul.f32 %v283_v4, %v277_v5  ;;  %v286_v8 = vmul.f32 %v283_v4, %v278_v6 }
  0x8b   : > { %v291_v9 = vpop.permute.xlu0 %290 }
  0x8c   : > { %v293_v10 = vadd.f32 %v291_v9, %v285_v7  ;;  %v294_v11 = vadd.f32 %v291_v9, %v286_v8 }
  0x8e   : > { %v296_v12 = vmax.f32 %v294_v11, 0.0  ;;  %v295_v13 = vmax.f32 %v293_v10, 0.0 }
  0x90   : > { %314 = vmatprep.subr.mxu0 %v296_v12  ;;  %630 = vmatprep.subr.mxu1 %v296_v12 }
  0x91   : > { %315 = vmatpush1.msra.mxu0 %v295_v13  ;;  %631 = vmatpush1.msra.mxu1 %v295_v13 }
  0x92   : > { %613 = vmatmul.mubr.msk.f32.vlgmr.msra.gmra.mrb[0].mxu0 %vm301_vm0, %v297_v14  ;;  %615 = vmatmul.mubr.msk.f32.vlgmr.msra.gmra.mrb[0].mxu1 %vm301_vm0, %v299_v15 }
  0x93   : > { %384 = vmatprep.mubr.f32.mxu0 %v684_v3  ;;  %396 = vmatprep.mubr.f32.mxu1 %v684_v3 }
  0x96   : > { %614 = vmatmul.mubr.msk.f32.gmra.mrb[2].mxu0 %vm301_vm0, %v298_v16  ;;  %616 = vmatmul.mubr.msk.f32.gmra.mrb[2].mxu1 %vm301_vm0, %v300_v17 }
 0x165   : > { %v380_v18 = vpop.f32.mrb[0].mxu0  ;;  %v392_v19 = vpop.f32.mrb[0].mxu1 }
 0x166   : > { %403 = vst [vmem:[%s270_s22] sm:$0xff] %v380_v18  ;;  %v382_v20 = vpop.f32.mrb[1].mxu0  ;;  %407 = vst [vmem:[%s270_s22 + $0x20] sm:$0xff] %v392_v19  ;;  %v394_v21 = vpop.f32.mrb[1].mxu1  ;;  %v423_v22 = vmul.f32 %v380_v18, %v380_v18  ;;  %v427_v23 = vmul.f32 %v392_v19, %v392_v19 }
 0x167   : > { %404 = vst [vmem:[%s270_s22 + $0x8] sm:$0xff] %v382_v20  ;;  %v411_v24 = vadd.f32 %v382_v20, %v380_v18  ;;  %408 = vst [vmem:[%s270_s22 + $0x28] sm:$0xff] %v394_v21  ;;  %v424_v25 = vmul.f32 %v382_v20, %v382_v20  ;;  %v417_v26 = vadd.f32 %v394_v21, %v392_v19 }
 0x168   : > { %v428_v27 = vmul.f32 %v394_v21, %v394_v21 }
 0x169   : > { %412 = vadd.xlane.f32.xlu1 %v411_v24  ;;  %v431_v28 = vadd.f32 %v424_v25, %v423_v22  ;;  %418 = vadd.xlane.f32.xlu0 %v417_v26  ;;  %v386_v29 = vpop.f32.mrb[2].mxu0  ;;  %v398_v31 = vpop.f32.mrb[2].mxu1 }
 0x16a   : > { %v437_v30 = vadd.f32 %v428_v27, %v427_v23  ;;  %405 = vst [vmem:[%s270_s22 + $0x10] sm:$0xff] %v386_v29  ;;  %v388_v32 = vpop.f32.mrb[3].mxu0  ;;  %409 = vst [vmem:[%s270_s22 + $0x30] sm:$0xff] %v398_v31  ;;  %v400_v33 = vpop.f32.mrb[3].mxu1  ;;  %v425_v34 = vmul.f32 %v386_v29, %v386_v29  ;;  %v429_v35 = vmul.f32 %v398_v31, %v398_v31 }
 0x16b   : > { %406 = vst [vmem:[%s270_s22 + $0x18] sm:$0xff] %v388_v32  ;;  %v426_v36 = vmul.f32 %v388_v32, %v388_v32  ;;  %410 = vst [vmem:[%s270_s22 + $0x38] sm:$0xff] %v400_v33  ;;  %v430_v37 = vmul.f32 %v400_v33, %v400_v33  ;;  %v414_v38 = vadd.f32 %v388_v32, %v386_v29 }
 0x16c   : > { %v420_v39 = vadd.f32 %v400_v33, %v398_v31 }
 0x16d   : > { %432 = vadd.xlane.f32.xlu1 %v431_v28  ;;  %v434_v40 = vadd.f32 %v426_v36, %v425_v34  ;;  %v440_v41 = vadd.f32 %v430_v37, %v429_v35 }
 0x171   : > { %438 = vadd.xlane.f32.xlu1 %v437_v30 }
 0x175   : > { %415 = vadd.xlane.f32.xlu1 %v414_v38 }
 0x179   : > { %421 = vadd.xlane.f32.xlu1 %v420_v39 }
 0x17d   : > { %435 = vadd.xlane.f32.xlu1 %v434_v40 }
 0x181   : > { %441 = vadd.xlane.f32.xlu1 %v440_v41 }
 0x1f6   : > { %v413_v44 = vpop.xlane.xlu1 %412  ;;  %v419_v45 = vpop.xlane.xlu0 %418 }
 0x1f7   : > { %v460_v46 = vadd.f32 %v456_v42, %v413_v44  ;;  %v462_v47 = vadd.f32 %v458_v43, %v419_v45 }
 0x1f9   : > { %465 = vst.msk [vmem:[%s761_s16] sm:$0xff] %vm447_vm1, %v460_v46  ;;  %467 = vst.msk [vmem:[%s761_s16 + $0x10] sm:$0xff] %vm447_vm1, %v462_v47 }
 0x1fa   : > { %v433_v49 = vpop.xlane.xlu1 %432 }
 0x1fb   : > { %v474_v50 = vadd.f32 %v617_v48, %v433_v49 }
 0x1fd   : > { %621 = vst.msk [vmem:[%s761_s16 + $0x20] sm:$0xff] %vm447_vm1, %v474_v50 }
 0x1fe   : > { %v439_v52 = vpop.xlane.xlu1 %438 }
 0x1ff   : > { %v476_v53 = vadd.f32 %v619_v51, %v439_v52 }
 0x201   : > { %623 = vst.msk [vmem:[%s761_s16 + $0x30] sm:$0xff] %vm447_vm1, %v476_v53 }
 0x202   : > { %v416_v55 = vpop.xlane.xlu1 %415 }
 0x203   : > { %v461_v56 = vadd.f32 %v457_v54, %v416_v55 }
 0x205   : > { %466 = vst.msk [vmem:[%s761_s16 + $0x8] sm:$0xff] %vm447_vm1, %v461_v56 }
 0x206   : > { %v422_v58 = vpop.xlane.xlu1 %421 }
 0x207   : > { %v463_v59 = vadd.f32 %v459_v57, %v422_v58 }
 0x209   : > { %468 = vst.msk [vmem:[%s761_s16 + $0x18] sm:$0xff] %vm447_vm1, %v463_v59 }
 0x20a   : > { %v436_v61 = vpop.xlane.xlu1 %435 }
 0x20b   : > { %v475_v62 = vadd.f32 %v618_v60, %v436_v61 }
 0x20d   : > { %622 = vst.msk [vmem:[%s761_s16 + $0x28] sm:$0xff] %vm447_vm1, %v475_v62 }
 0x20e   : > { %v442_v0 = vpop.xlane.xlu1 %441 }
 0x20f   : > { %v477_v1 = vadd.f32 %v620_v63, %v442_v0 }
 0x211   : > { %624 = vst.msk [vmem:[%s761_s16 + $0x38] sm:$0xff] %vm447_vm1, %v477_v1 }
 0x212 PF: > { %s16_s20 = sadd.s32 1, %s681_s20   ;;  %s821_s18 = smov %s677_s19 }
 0x213   : > { %p13_p5 = scmp.ge.s32.totalorder %s16_s20, 4   ;;  %s822_s19 = smov %s824_s21 }
 0x215   :  { %15 = sbr.rel (!%p13_p5) target bundleno = 2 (0x2), region = 83 }

// kernel: res_layer_forward.7
= control target key start
LH: loop header
LB: loop body
LE: loop exit
PB: predicated region body
PF: predicated region fallthrough
CT: control target
= control target key end

     0   :  { %s470_s12 = smov 0   ;;  %s472_s13 = smov 0   ;;  %s534_s0 = inlined_call_operand.vmem [shape: f32[32,1], index: 0, kind: input, shape index: {}]   ;;  %s535_s1 = inlined_call_operand.vmem [shape: f32[32,1], index: 1, kind: input, shape index: {}]   ;;  %s536_s2 = inlined_call_operand.vmem [shape: f32[2,32,256], index: 2, kind: input, shape index: {}]   ;;  %s537_s3 = inlined_call_operand.vmem [shape: f32[2,32,256], index: 3, kind: output, shape index: {}]  }
   0x1   :  { %s474_s14 = smov 0  }
   0x2 LB: > { %s25_s15 = sadd.s32 1, %s443_s13  ;;  %p389_p0 = scmp.ge.s32.totalorder %s447_s14, 1  ;;  %s447_s14 = sphi %s474_s14, %s13_s14   ;;  %s443_s13 = sphi %s472_s13, %s539_s13   ;;  %s439_s12 = sphi %s470_s12, %s538_s12  }
   0x3   : > { %p27_p1 = scmp.ge.s32.totalorder %s25_s15, 2  ;;  %p158_p2 = scmp.lt.s32.totalorder %s447_s14, 3 }
   0x5   : > { %s541_s15 = smov (%p27_p1, %s25_s15), 0  ;;  %p159_p3 = pnand %p389_p0, %p158_p2 }
   0x6   : > { %v220_v0 = vld [vmem:[%s534_s0 + $0x10] sm:$0xff] (!%p159_p3)  ;;  %v218_v1 = vld [vmem:[%s534_s0] sm:$0xff] (!%p159_p3)  ;;  %v449_v2 = vmov (!%p159_p3), 0   ;;  %v221_v3 = vld [vmem:[%s534_s0 + $0x18] sm:$0xff] (!%p159_p3)  ;;  %p191_p4 = scmp.lt.s32.totalorder (!%p159_p3), %s439_s12, 1 }
   0x7   : > { %162 = sbr.rel (%p159_p3) target bundleno = 154 (0x9a), region = 32  ;;  %424 = vset.pattern.permute.xlu1 (!%p159_p3), %v449_v2  ;;  %423 = vset.pattern.permute.xlu0 (!%p159_p3), %v449_v2  ;;  %v219_v4 = vld [vmem:[%s534_s0 + $0x8] sm:$0xff] (!%p159_p3)  ;;  %v250_v6 = vld [vmem:[%s535_s1] sm:$0xff] (!%p159_p3)  ;;  %v253_v7 = vld [vmem:[%s535_s1 + $0x18] sm:$0xff] (!%p159_p3) }
   0x8   : > { %234 = vperm.xlu1 (!%p159_p3), %424, %v220_v0   ;;  %224 = vperm.xlu0 (!%p159_p3), %423, %v218_v1   ;;  %v251_v5 = vld [vmem:[%s535_s1 + $0x8] sm:$0xff] (!%p159_p3)  ;;  %v252_v8 = vld [vmem:[%s535_s1 + $0x10] sm:$0xff] (!%p159_p3) }
   0xc   : > { %239 = vperm.xlu1 (!%p159_p3), %424, %v221_v3   ;;  %229 = vperm.xlu0 (!%p159_p3), %423, %v219_v4  }
   0xe   : > { %s543_s12 = smov (!%p191_p4, %s439_s12), 1 }
   0xf   : > { %s396_s5 = sshll.u32 %s543_s12, 6 }
  0x10   : > { %261 = vperm.xlu1 %424, %v251_v5   ;;  %256 = vperm.xlu0 %423, %v250_v6   ;;  %s198_s8 = scalar_lea.vmem %s536_s2, %s396_s5  ;;  %s208_s11 = scalar_lea.vmem %s537_s3, %s396_s5 }
  0x11   : > { %v210_v11 = vld [vmem:[%s198_s8] sm:$0xff]  ;;  %v211_v12 = vld [vmem:[%s198_s8 + $0x8] sm:$0xff]  ;;  %v212_v15 = vld [vmem:[%s198_s8 + $0x10] sm:$0xff] }
  0x12   : > { %v213_v16 = vld [vmem:[%s198_s8 + $0x18] sm:$0xff]  ;;  %v214_v17 = vld [vmem:[%s198_s8 + $0x20] sm:$0xff]  ;;  %v215_v18 = vld [vmem:[%s198_s8 + $0x28] sm:$0xff] }
  0x13   : > { %v216_v21 = vld [vmem:[%s198_s8 + $0x30] sm:$0xff]  ;;  %v217_v22 = vld [vmem:[%s198_s8 + $0x38] sm:$0xff] }
  0x14   : > { %271 = vperm.xlu1 %424, %v253_v7   ;;  %266 = vperm.xlu0 %423, %v252_v8  }
  0x87   : > { %v235_v9 = vpop.permute.xlu1 %234  ;;  %v225_v10 = vpop.permute.xlu0 %224 }
  0x88   : > { %v242_v19 = vmul.f32 %v225_v10, %v210_v11  ;;  %v243_v20 = vmul.f32 %v225_v10, %v211_v12  ;;  %v246_v31 = vmul.f32 %v235_v9, %v214_v17  ;;  %v247_v32 = vmul.f32 %v235_v9, %v215_v18 }
  0x8b   : > { %v240_v13 = vpop.permute.xlu1 %239  ;;  %v230_v14 = vpop.permute.xlu0 %229 }
  0x8c   : > { %v244_v23 = vmul.f32 %v230_v14, %v212_v15  ;;  %v245_v24 = vmul.f32 %v230_v14, %v213_v16  ;;  %v248_v33 = vmul.f32 %v240_v13, %v216_v21  ;;  %v249_v34 = vmul.f32 %v240_v13, %v217_v22 }
  0x8f   : > { %v262_v25 = vpop.permute.xlu1 %261  ;;  %v257_v26 = vpop.permute.xlu0 %256 }
  0x90   : > { %v276_v27 = vadd.f32 %v262_v25, %v244_v23  ;;  %v277_v28 = vadd.f32 %v262_v25, %v245_v24  ;;  %v274_v29 = vadd.f32 %v257_v26, %v242_v19  ;;  %v275_v30 = vadd.f32 %v257_v26, %v243_v20 }
  0x92   : > { %v284_v35 = vmax.f32 %v276_v27, 0.0  ;;  %v285_v36 = vmax.f32 %v277_v28, 0.0  ;;  %v282_v37 = vmax.f32 %v274_v29, 0.0  ;;  %v283_v38 = vmax.f32 %v275_v30, 0.0 }
  0x93   : > { %v272_v39 = vpop.permute.xlu1 %271  ;;  %v267_v40 = vpop.permute.xlu0 %266 }
  0x94   : > { %292 = vst [vmem:[%s208_s11 + $0x10] sm:$0xff] %v284_v35  ;;  %293 = vst [vmem:[%s208_s11 + $0x18] sm:$0xff] %v285_v36  ;;  %v280_v41 = vadd.f32 %v272_v39, %v248_v33  ;;  %v281_v42 = vadd.f32 %v272_v39, %v249_v34  ;;  %v278_v43 = vadd.f32 %v267_v40, %v246_v31 }
  0x95   : > { %290 = vst [vmem:[%s208_s11] sm:$0xff] %v282_v37  ;;  %291 = vst [vmem:[%s208_s11 + $0x8] sm:$0xff] %v283_v38  ;;  %v279_v44 = vadd.f32 %v267_v40, %v247_v32 }
  0x96   : > { %v288_v45 = vmax.f32 %v280_v41, 0.0  ;;  %v289_v46 = vmax.f32 %v281_v42, 0.0  ;;  %v286_v47 = vmax.f32 %v278_v43, 0.0 }
  0x97   : > { %v287_v48 = vmax.f32 %v279_v44, 0.0 }
  0x98   : > { %296 = vst [vmem:[%s208_s11 + $0x30] sm:$0xff] %v288_v45  ;;  %297 = vst [vmem:[%s208_s11 + $0x38] sm:$0xff] %v289_v46 }
  0x99   : > { %294 = vst [vmem:[%s208_s11 + $0x20] sm:$0xff] %v286_v47  ;;  %295 = vst [vmem:[%s208_s11 + $0x28] sm:$0xff] %v287_v48 }
  0x9a PF: > { %s13_s14 = sadd.s32 1, %s447_s14   ;;  %s538_s12 = smov %s443_s13 }
  0x9b   : > { %p10_p5 = scmp.ge.s32.totalorder %s13_s14, 4   ;;  %s539_s13 = smov %s541_s15 }
  0x9d   :  { %12 = sbr.rel (!%p10_p5) target bundleno = 2 (0x2), region = 62 }

</bundles_post_ra>
